<compile_context>
chip_gen: v6e
topology: v6e:2x2x1
jax: 0.10.0
libtpu: 0.0.40
codegen_flags: <defaults>
</compile_context>

<pallas_src>
import functools

import jax
import jax.numpy as jnp
from jax import lax
from jax.experimental import pallas as pl
from jax.experimental.pallas import tpu as pltpu


def _round_up(a, b):
    return (a + b - 1) // b * b


def _vmem_capacity_bytes():
    try:
        cap = int(pltpu.get_tpu_info().vmem_capacity_bytes)
        if cap >= 16 * 1024 * 1024:
            return min(cap, 128 * 1024 * 1024)
    except Exception:
        pass
    return 64 * 1024 * 1024   # conservative: v7x per-TensorCore VMEM


# --------------------------------------------------------------------------
# Fast path: one row-tile covers the full spatial extent.
# --------------------------------------------------------------------------
def _instance_norm_kernel(x_ref, w_ref, b_ref, o_ref, *, eps, inv_s):
    # x_ref: (tr, S)  rows = (batch, channel) instances, lanes = spatial
    # w_ref/b_ref: (tr, 1) per-row affine params.
    xf = x_ref[...].astype(jnp.float32)
    mean = jnp.sum(xf, axis=-1, keepdims=True) * inv_s          # (tr, 1)
    xc = xf - mean
    var = jnp.sum(xc * xc, axis=-1, keepdims=True) * inv_s      # biased (unbiased=False)
    inv_std = lax.rsqrt(var + eps)
    scale = w_ref[...].astype(jnp.float32) * inv_std            # (tr, 1)
    o_ref[...] = (xc * scale + b_ref[...].astype(jnp.float32)).astype(o_ref.dtype)


# --------------------------------------------------------------------------
# Large-spatial fallback: two-level (row_tiles, s_tiles) grid.
# --------------------------------------------------------------------------
def _moments_kernel(x_ref, w_ref, b_ref, scale_ref, shift_ref, s1_ref, s2_ref,
                    *, eps, inv_s, spatial):
    s_idx = pl.program_id(1)

    @pl.when(s_idx == 0)
    def _():
        s1_ref[...] = jnp.zeros_like(s1_ref)
        s2_ref[...] = jnp.zeros_like(s2_ref)

    tr, ts = x_ref.shape
    col = lax.broadcasted_iota(jnp.int32, (tr, ts), 1) + s_idx * ts
    xf = jnp.where(col < spatial, x_ref[...].astype(jnp.float32), 0.0)
    s1_ref[...] += jnp.sum(xf, axis=-1, keepdims=True)
    s2_ref[...] += jnp.sum(xf * xf, axis=-1, keepdims=True)

    @pl.when(s_idx == pl.num_programs(1) - 1)
    def _():
        mean = s1_ref[...] * inv_s
        var = jnp.maximum(s2_ref[...] * inv_s - mean * mean, 0.0)
        inv_std = lax.rsqrt(var + eps)
        scale = w_ref[...].astype(jnp.float32) * inv_std
        scale_ref[...] = scale
        shift_ref[...] = b_ref[...].astype(jnp.float32) - mean * scale


def _normalize_kernel(x_ref, scale_ref, shift_ref, o_ref):
    o_ref[...] = (x_ref[...].astype(jnp.float32) * scale_ref[...]
                  + shift_ref[...]).astype(o_ref.dtype)


# --------------------------------------------------------------------------
# Wrapper
# --------------------------------------------------------------------------
def instance_norm_nd(x, weight, bias, eps=1e-5, *, tile_budget_bytes=None):
    """InstanceNorm over all dims >= 2 of x (NC... layout), affine per channel."""
    n, c = x.shape[0], x.shape[1]
    spatial = 1
    for d in x.shape[2:]:
        spatial *= d
    rows = n * c

    itemsize = jnp.dtype(x.dtype).itemsize
    row_align = {4: 8, 2: 16, 1: 32}.get(itemsize, 8)

    cap = _vmem_capacity_bytes()
    tile_budget = int(tile_budget_bytes) if tile_budget_bytes else cap // 3
    vmem_limit = (cap * 5) // 8            # ~40 MiB on v7x, ~80 MiB on v5e/v6e

    # (rows, spatial) view: free contiguous reshape, no padding / copies.
    x2 = x.reshape(rows, spatial)
    w2 = jnp.tile(weight.reshape(-1), n).reshape(rows, 1)   # per-row affine
    b2 = jnp.tile(bias.reshape(-1), n).reshape(rows, 1)

    eps_f = float(eps)
    inv_s = 1.0 / float(spatial)

    # Resident bytes/row in the single-pass kernel: 2x input + 2x output
    # buffers + ~2 rows of f32 temporaries (xf, xc).
    per_row_bytes = spatial * (4 * itemsize + 8)
    min_rows = rows if rows < row_align else row_align

    if min_rows * per_row_bytes <= tile_budget:
        # ---------------- fast path: single pass, grid over row tiles -------
        if rows <= row_align:
            tr = rows                                  # full-dim block (legal)
        else:
            max_tr = max(row_align,
                         (tile_budget // per_row_bytes) // row_align * row_align)
            tr_depth = _round_up(pl.cdiv(rows, 8), row_align)    # >= ~8 steps
            tr_floor = _round_up(pl.cdiv(512 * 1024, max(spatial * itemsize, 1)),
                                 row_align)            # amortize per-step cost
            tr = min(max(tr_depth, tr_floor), max_tr)
            if tr >= rows:
                tr = rows                              # single full-dim tile

        kernel = functools.partial(_instance_norm_kernel, eps=eps_f, inv_s=inv_s)
        # TODO(synk): on v7x, if xprof shows exposed input DMA at tile
        # boundaries, set pipeline_mode=pl.Buffered(3) on the x BlockSpec.
        out = pl.pallas_call(
            kernel,
            out_shape=jax.ShapeDtypeStruct((rows, spatial), x.dtype),
            grid_spec=pltpu.PrefetchScalarGridSpec(
                num_scalar_prefetch=0,
                grid=(pl.cdiv(rows, tr),),
                in_specs=[
                    pl.BlockSpec((tr, spatial), lambda r: (r, 0)),
                    pl.BlockSpec((tr, 1), lambda r: (r, 0)),
                    pl.BlockSpec((tr, 1), lambda r: (r, 0)),
                ],
                out_specs=pl.BlockSpec((tr, spatial), lambda r: (r, 0)),
            ),
            compiler_params=pltpu.CompilerParams(
                dimension_semantics=("parallel",),
                vmem_limit_bytes=vmem_limit,
            ),
        )(x2, w2, b2)
    else:
        # -------- large-spatial fallback: two-level (rows, S) grid ----------
        if rows <= row_align:
            tr = rows
        else:
            tr = min(_round_up(rows, row_align), _round_up(64, row_align))
            if tr >= rows:
                tr = rows
        # Normalize pass is the bigger VMEM consumer: 2x in + 2x out + f32 tmp.
        per_elem = 4 * itemsize + 4
        ts = (tile_budget // max(tr * per_elem, 1)) // 128 * 128
        ts = max(128, min(ts, _round_up(spatial, 128)))
        grid2 = (pl.cdiv(rows, tr), pl.cdiv(spatial, ts))

        scale, shift = pl.pallas_call(
            functools.partial(_moments_kernel, eps=eps_f, inv_s=inv_s,
                              spatial=spatial),
            out_shape=(jax.ShapeDtypeStruct((rows, 1), jnp.float32),
                       jax.ShapeDtypeStruct((rows, 1), jnp.float32)),
            grid_spec=pltpu.PrefetchScalarGridSpec(
                num_scalar_prefetch=0,
                grid=grid2,
                in_specs=[
                    pl.BlockSpec((tr, ts), lambda r, s: (r, s)),
                    pl.BlockSpec((tr, 1), lambda r, s: (r, 0)),
                    pl.BlockSpec((tr, 1), lambda r, s: (r, 0)),
                ],
                out_specs=[
                    pl.BlockSpec((tr, 1), lambda r, s: (r, 0)),
                    pl.BlockSpec((tr, 1), lambda r, s: (r, 0)),
                ],
                scratch_shapes=[pltpu.VMEM((tr, 1), jnp.float32),
                                pltpu.VMEM((tr, 1), jnp.float32)],
            ),
            compiler_params=pltpu.CompilerParams(
                dimension_semantics=("parallel", "arbitrary"),
                vmem_limit_bytes=vmem_limit,
            ),
        )(x2, w2, b2)

        out = pl.pallas_call(
            _normalize_kernel,
            out_shape=jax.ShapeDtypeStruct((rows, spatial), x.dtype),
            grid_spec=pltpu.PrefetchScalarGridSpec(
                num_scalar_prefetch=0,
                grid=grid2,
                in_specs=[
                    pl.BlockSpec((tr, ts), lambda r, s: (r, s)),
                    pl.BlockSpec((tr, 1), lambda r, s: (r, 0)),
                    pl.BlockSpec((tr, 1), lambda r, s: (r, 0)),
                ],
                out_specs=pl.BlockSpec((tr, ts), lambda r, s: (r, s)),
            ),
            compiler_params=pltpu.CompilerParams(
                dimension_semantics=("parallel", "parallel"),
                vmem_limit_bytes=vmem_limit,
            ),
        )(x2, scale, shift)

    return out.reshape(x.shape)


def instance_norm_ref(x, weight, bias, eps=1e-5):
    """Pure-JAX reference matching the PyTorch forward exactly."""
    dims = tuple(range(2, x.ndim))
    mean = jnp.mean(x, axis=dims, keepdims=True)
    var = jnp.mean((x - mean) ** 2, axis=dims, keepdims=True)  # unbiased=False
    xn = (x - mean) / jnp.sqrt(var + eps)
    shape = (1, -1) + (1,) * (x.ndim - 2)
    return weight.reshape(shape) * xn + bias.reshape(shape)


def _check(x, weight, bias, eps=1e-5, atol=1e-5, rtol=1e-5, **kw):
    out = jax.block_until_ready(instance_norm_nd(x, weight, bias, eps=eps, **kw))
    ref = instance_norm_ref(x, weight, bias, eps=eps)
    assert out.shape == x.shape and out.dtype == x.dtype
    assert jnp.allclose(out, ref, atol=atol, rtol=rtol), "mismatch vs reference"
    return out


if __name__ == "__main__":
    key = jax.random.PRNGKey(0)
    k0, k1, k2, k3, k4 = jax.random.split(key, 5)

    # Primary example: module defaults (weight=ones, bias=zeros).
    N, C, H, W = 2, 4, 16, 16
    x = jax.random.normal(k0, (N, C, H, W), dtype=jnp.float32)
    weight = jnp.ones((C,), dtype=jnp.float32)
    bias = jnp.zeros((C,), dtype=jnp.float32)
    _check(x, weight, bias)

    # Ragged shape (rows < 8, spatial not a multiple of 128): full-dim blocks,
    # no wrapper padding / cropping.
    xr = jax.random.normal(k1, (2, 3, 7, 9), dtype=jnp.float32)
    _check(xr, jnp.full((3,), 1.5, jnp.float32), jnp.full((3,), 0.25, jnp.float32))

    # Multi-step row grid with a partial last row tile (rows=640 -> tr=512).
    xm = jax.random.normal(k2, (16, 40, 16, 16), dtype=jnp.float32)
    _check(xm, jax.random.normal(k3, (40,), jnp.float32),
           jnp.zeros((40,), jnp.float32))

    # Two-level (rows, S) fallback path: small VMEM tile budget forces the
    # S-tiled moments + normalize kernels, with a masked partial S tile.
    xl = jax.random.normal(k4, (1, 8, 8, 65, 65), dtype=jnp.float32)
    _check(xl, jnp.full((8,), 1.37, jnp.float32), jnp.full((8,), -0.5, jnp.float32),
           atol=1e-4, rtol=1e-4, tile_budget_bytes=2 * 1024 * 1024)

    print("KERNEL_OK")
</pallas_src>

<mosaic_0001>
module attributes {stable_mosaic.version = 11 : i64} {
  func.func @_instance_norm_kernel(%arg0: i32, %arg1: memref<8x256xf32, #tpu.memory_space<vmem>>, %arg2: memref<8x1xf32, #tpu.memory_space<vmem>>, %arg3: memref<8x1xf32, #tpu.memory_space<vmem>>, %arg4: memref<8x256xf32, #tpu.memory_space<vmem>>) attributes {dimension_semantics = [#tpu.dimension_semantics<parallel>], iteration_bounds = array<i64: 1>, scalar_prefetch = 0 : i64, scratch_operands = 0 : i64, tpu.core_type = #tpu.core_type<tc>, window_params = [{transform_indices = @transform_0, window_bounds = array<i64: 8, 256>}, {transform_indices = @transform_1, window_bounds = array<i64: 8, 1>}, {transform_indices = @transform_2, window_bounds = array<i64: 8, 1>}, {transform_indices = @transform_3, window_bounds = array<i64: 8, 256>}]} {
    %c0 = arith.constant 0 : index
    %c0_0 = arith.constant 0 : index
    %0 = vector.load %arg1[%c0, %c0_0] : memref<8x256xf32, #tpu.memory_space<vmem>>, vector<8x256xf32>
    %cst = arith.constant dense<0.000000e+00> : vector<8xf32>
    %1 = vector.multi_reduction <add>, %0, %cst [1] : vector<8x256xf32> to vector<8xf32>
    %2 = vector.shape_cast %1 : vector<8xf32> to vector<8x1xf32>
    %cst_1 = arith.constant 3.906250e-03 : f32
    %3 = vector.broadcast %cst_1 : f32 to vector<8x1xf32>
    %4 = arith.mulf %2, %3 : vector<8x1xf32>
    %5 = vector.broadcast %4 : vector<8x1xf32> to vector<8x256xf32>
    %6 = arith.subf %0, %5 : vector<8x256xf32>
    %7 = arith.mulf %6, %6 : vector<8x256xf32>
    %cst_2 = arith.constant dense<0.000000e+00> : vector<8xf32>
    %8 = vector.multi_reduction <add>, %7, %cst_2 [1] : vector<8x256xf32> to vector<8xf32>
    %9 = vector.shape_cast %8 : vector<8xf32> to vector<8x1xf32>
    %cst_3 = arith.constant 3.906250e-03 : f32
    %10 = vector.broadcast %cst_3 : f32 to vector<8x1xf32>
    %11 = arith.mulf %9, %10 : vector<8x1xf32>
    %cst_4 = arith.constant 9.99999974E-6 : f32
    %12 = vector.broadcast %cst_4 : f32 to vector<8x1xf32>
    %13 = arith.addf %11, %12 : vector<8x1xf32>
    %14 = math.rsqrt %13 : vector<8x1xf32>
    %c0_5 = arith.constant 0 : index
    %c0_6 = arith.constant 0 : index
    %15 = vector.load %arg2[%c0_5, %c0_6] : memref<8x1xf32, #tpu.memory_space<vmem>>, vector<8x1xf32>
    %16 = arith.mulf %15, %14 : vector<8x1xf32>
    %17 = vector.broadcast %16 : vector<8x1xf32> to vector<8x256xf32>
    %18 = arith.mulf %6, %17 : vector<8x256xf32>
    %c0_7 = arith.constant 0 : index
    %c0_8 = arith.constant 0 : index
    %19 = vector.load %arg3[%c0_7, %c0_8] : memref<8x1xf32, #tpu.memory_space<vmem>>, vector<8x1xf32>
    %20 = vector.broadcast %19 : vector<8x1xf32> to vector<8x256xf32>
    %21 = arith.addf %18, %20 : vector<8x256xf32>
    %c0_9 = arith.constant 0 : index
    %c0_10 = arith.constant 0 : index
    %22 = vector.load %arg4[%c0_9, %c0_10] : memref<8x256xf32, #tpu.memory_space<vmem>>, vector<8x256xf32>
    tpu.vector_store %arg4[%c0_9, %c0_10], %21 {strides = array<i32>} : memref<8x256xf32, #tpu.memory_space<vmem>>, vector<8x256xf32>,
    return
  }
  func.func @transform_0(%arg0: i32) -> (i32, i32) {
    %c0_i32 = arith.constant 0 : i32
    %c0_i32_0 = arith.constant 0 : i32
    return %arg0, %c0_i32 : i32, i32
  }
  func.func @transform_1(%arg0: i32) -> (i32, i32) {
    %c0_i32 = arith.constant 0 : i32
    %c0_i32_0 = arith.constant 0 : i32
    return %arg0, %c0_i32 : i32, i32
  }
  func.func @transform_2(%arg0: i32) -> (i32, i32) {
    %c0_i32 = arith.constant 0 : i32
    %c0_i32_0 = arith.constant 0 : i32
    return %arg0, %c0_i32 : i32, i32
  }
  func.func @transform_3(%arg0: i32) -> (i32, i32) {
    %c0_i32 = arith.constant 0 : i32
    %c0_i32_0 = arith.constant 0 : i32
    return %arg0, %c0_i32 : i32, i32
  }
}

</mosaic_0001>

<bundles_post_ra>
// kernel: tpu_custom_call.1
= control target key start
LH: loop header
LB: loop body
LE: loop exit
PB: predicated region body
PF: predicated region fallthrough
CT: control target
= control target key end

     0   :  { %s129_s0 = inlined_call_operand.vmem [shape: f32[8,256], index: 0, kind: input, shape index: {}]   ;;  %s130_s1 = inlined_call_operand.vmem [shape: f32[8,1], index: 1, kind: input, shape index: {}]   ;;  %s131_s2 = inlined_call_operand.vmem [shape: f32[8,1], index: 2, kind: input, shape index: {}]   ;;  %s132_s3 = inlined_call_operand.hbm [shape: f32[8,256], index: 3, kind: output, shape index: {}]  }
   0x1   :  { %v15_v0 = vld [vmem:[%s129_s0] sm:$0xff]  ;;  %v16_v1 = vld [vmem:[%s129_s0 + $0x8] sm:$0xff] }
   0x2   :  { %8 = vsyncpa [#allocation3], 0  ;;  %v17_v2 = vadd.f32 %v16_v1, %v15_v0  ;;  %v92_v10 = vmov 0   ;;  %v31_v14 = vld [vmem:[%s130_s1] sm:$0xff]  ;;  %s93_s19 = smov [#allocation2]  }
   0x3   :  { %66 = vset.pattern.permute.xlu1 %v92_v10  ;;  %67 = vset.pattern.permute.xlu0 %v92_v10  ;;  %v40_v17 = vld [vmem:[%s131_s2] sm:$0xff]  ;;  %s56_s20 = sshll.u32 %s93_s19, 4  ;;  %s57_s20 = int_to_ptr.vmem [resolvable:$true] %s56_s20 }
   0x4   :  { %18 = vadd.xlane.f32.xlu0 %v17_v2  ;;  %s70_s1 = scalar_lea.vmem %s57_s20, 256  ;;  %p75_p1 = scmp.lt.s32.totalorder %s57_s20, %s57_s20 }
   0x5   :  { %p71_p0 = scmp.ne.s32.totalorder %s57_s20, %s70_s1  ;;  %p76_p2 = scmp.lt.s32.totalorder %s70_s1, %s70_s1 }
   0x7   :  { %p77_p3 = por %p76_p2, %p75_p1 }
   0x9   :  { %p78_p4 = pnand %p77_p3, %p71_p0 }
  0x8d   :  { %v19_v3 = vpop.xlane.xlu0 %18 }
  0x8e   :  { %v20_v4 = vmul.f32 0.00390625, %v19_v3 }
  0x90   :  { %v21_v5 = vsub.f32 %v15_v0, %v20_v4  ;;  %v22_v6 = vsub.f32 %v16_v1, %v20_v4 }
  0x92   :  { %v23_v7 = vmul.f32 %v21_v5, %v21_v5  ;;  %v24_v8 = vmul.f32 %v22_v6, %v22_v6 }
  0x94   :  { %v25_v9 = vadd.f32 %v24_v8, %v23_v7 }
  0x96   :  { %26 = vadd.xlane.f32.xlu0 %v25_v9 }
 0x11f   :  { %v27_v11 = vpop.xlane.xlu0 %26 }
 0x120   :  { %v28_v12 = vmul.f32 0.00390625, %v27_v11 }
 0x122   :  { %v29_v13 = vadd.f32 1e-05, %v28_v12 }
 0x124   :  { %68 = vrsqrt.f32 %v29_v13 }
 0x131   :  { %v69_v15 = vpop.eup %68 }
 0x132   :  { %v32_v16 = vmul.f32 %v69_v15, %v31_v14 }
 0x134   :  { %35 = vperm.xlu1 %66, %v32_v16  }
 0x138   :  { %43 = vperm.xlu1 %66, %v40_v17  }
 0x1af   :  { %v36_v18 = vpop.permute.xlu1 %35 }
 0x1b0   :  { %v38_v19 = vmul.f32 %v36_v18, %v21_v5  ;;  %v39_v20 = vmul.f32 %v36_v18, %v22_v6 }
 0x1b3   :  { %v44_v21 = vpop.permute.xlu1 %43 }
 0x1b4   :  { %v46_v22 = vadd.f32 %v44_v21, %v38_v19  ;;  %v47_v23 = vadd.f32 %v44_v21, %v39_v20 }
 0x1b6   :  { %48 = vst [vmem:[#allocation2] sm:$0xff] %v46_v22  ;;  %49 = vst [vmem:[#allocation2 + $0x8] sm:$0xff] %v47_v23 }
 0x1b7   :  { %81 = shalt.err (!%p78_p4)
}
 0x1b8   :  { %59 = dma.vmem_to_hbm [thread:$0]  %s57_s20, 256, %s132_s3, [#allocation3]  }
 0x1b9   :  { %90 = dma.done.wait [#allocation3], 256  }
 0x1ba   :  { %91 = vsyncadd [#allocation3], 4294967040 }
 0x1bb   :  { %63 = vsyncpa [#allocation3], 1 }

</bundles_post_ra>
